<compile_context>
chip_gen: v5e
topology: v5e:2x2
jax: 0.10.0
libtpu: 0.0.40
codegen_flags: <defaults>
</compile_context>

<pallas_src>
import functools

import jax
import jax.numpy as jnp
from jax import lax
from jax.experimental import pallas as pl
from jax.experimental.pallas import tpu as pltpu

NLAYERS = 7
PAD = 128          # every in/out feature dim zero-padded to 128 lanes
BLOCK_B = 256      # batch tile (rows) when batch is large; multiple of 8


def mlp_kernel(x_ref, w_ref, b_ref, o_ref):
    """Fused forward: 6x (Linear+ReLU) -> Linear -> 2-class softmax (sigmoid form).

    x_ref: (tb, 128) bf16   (lanes 9..127 are zero)
    w_ref: (7, 128, 128) bf16 packed, pre-padded weight slab (layer i = w_ref[i])
    b_ref: (8, 128) f32 packed bias slab (row i = layer i bias, row 7 unused)
    o_ref: (tb, 128) f32    (lane 0 = P(class 0), lane 1 = P(class 1), rest 0)
    """
    h = x_ref[...]                       # bf16 (tb, 128)
    logits = None
    for i in range(NLAYERS):             # static unroll; w_ref[i] is a free static slice
        acc = jnp.dot(h, w_ref[i], preferred_element_type=jnp.float32)
        acc = acc + b_ref[i]             # f32 accumulate + bias
        if i < NLAYERS - 1:
            h = jnp.maximum(acc, 0.0).astype(jnp.bfloat16)  # ReLU, back to bf16 for MXU
        else:
            logits = acc                 # (tb, 128) f32; only lanes 0,1 meaningful
        # dropout1 / dropout2: identity in eval mode

    # softmax over 2 classes == sigmoid of the logit difference (exact identity)
    d = logits[:, 1:2] - logits[:, 0:1]                      # (tb, 1)
    p1 = pl.reciprocal(1.0 + jnp.exp(-d), approx=True)       # EUP exp + EUP recip
    p0 = 1.0 - p1

    lane = lax.broadcasted_iota(jnp.int32, o_ref.shape, dimension=1)
    o_ref[...] = jnp.where(lane == 0, p0, jnp.where(lane == 1, p1, 0.0))


def _round_up(x, m):
    return (x + m - 1) // m * m


@jax.jit
def mymodule3_forward(x, w_slab, b_slab):
    """x: (B, 9) float32. Returns (B, 2) softmax probabilities (float32)."""
    B, F = x.shape
    tb = min(BLOCK_B, _round_up(B, 8))       # batch tile, multiple of 8
    Bp = _round_up(B, tb)                    # padded batch
    nb = Bp // tb

    # lane-dense, bf16, zero-padded input slab (B rows valid, 9 lanes valid)
    xp = jnp.zeros((Bp, PAD), jnp.bfloat16).at[:B, :F].set(x.astype(jnp.bfloat16))

    out = pl.pallas_call(
        mlp_kernel,
        out_shape=jax.ShapeDtypeStruct((Bp, PAD), jnp.float32),
        grid=(nb,),
        in_specs=[
            pl.BlockSpec((tb, PAD), lambda i: (i, 0)),              # batch tile of x
            pl.BlockSpec((NLAYERS, PAD, PAD), lambda i: (0, 0, 0)), # weights: VMEM-resident
            pl.BlockSpec((8, PAD), lambda i: (0, 0)),               # biases:  VMEM-resident
        ],
        out_specs=pl.BlockSpec((tb, PAD), lambda i: (i, 0)),        # lane-dense output
        compiler_params=pltpu.CompilerParams(
            dimension_semantics=("parallel",),                      # v7x: shard batch on 2 TCs
        ),
    )(xp, w_slab, b_slab)

    return out[:B, :2]


def init_params(key):
    """Deterministic xavier-uniform-style init (weight_mode=default, bias=0)."""
    sizes = [(9, 36), (36, 36), (36, 36), (36, 36), (36, 36), (36, 36), (36, 2)]
    params = []
    for fan_in, fan_out in sizes:
        key, wk = jax.random.split(key)
        limit = jnp.sqrt(6.0 / (fan_in + fan_out))
        # stored transposed: (in_features, out_features) so y = x @ W + b
        w_t = jax.random.uniform(wk, (fan_in, fan_out), jnp.float32,
                                 minval=-limit, maxval=limit)
        b = jnp.zeros((fan_out,), jnp.float32)
        params.append((w_t, b))
    return params


def pack_params(params):
    """Pack per-layer (W_t, b) into one padded bf16 weight slab + one f32 bias slab."""
    w_slab = jnp.zeros((NLAYERS, PAD, PAD), jnp.float32)
    b_slab = jnp.zeros((8, PAD), jnp.float32)
    for i, (w_t, b) in enumerate(params):
        fin, fout = w_t.shape
        w_slab = w_slab.at[i, :fin, :fout].set(w_t)
        b_slab = b_slab.at[i, :fout].set(b)
    return w_slab.astype(jnp.bfloat16), b_slab


def reference_forward(x, params):
    """Pure-JAX f32 reference for sanity checking."""
    h = x
    for i, (w_t, b) in enumerate(params):
        h = h @ w_t + b
        if i < NLAYERS - 1:
            h = jnp.maximum(h, 0.0)
    return jax.nn.softmax(h, axis=-1)


if __name__ == "__main__":
    key = jax.random.PRNGKey(0)
    pkey, xkey = jax.random.split(key)

    params = init_params(pkey)
    w_slab, b_slab = pack_params(params)

    # small deterministic batch (batch=8, in_features=9)
    x = jax.random.normal(xkey, (8, 9), jnp.float32)

    out = jax.block_until_ready(mymodule3_forward(x, w_slab, b_slab))
    ref = reference_forward(x, params)

    assert out.shape == (8, 2)
    # bf16 MXU operands -> compare against f32 reference with a bf16-level tolerance
    assert jnp.allclose(out, ref, atol=2e-2, rtol=2e-2), "mismatch vs reference"
    # rows of a 2-class softmax sum to 1 (exact by construction: p0 = 1 - p1)
    assert jnp.allclose(jnp.sum(out, axis=-1), 1.0, atol=1e-5)

    # exercise the multi-tile grid + batch-padding path as well
    x2 = jax.random.normal(jax.random.PRNGKey(3), (300, 9), jnp.float32)
    out2 = jax.block_until_ready(mymodule3_forward(x2, w_slab, b_slab))
    ref2 = reference_forward(x2, params)
    assert out2.shape == (300, 2)
    assert jnp.allclose(out2, ref2, atol=2e-2, rtol=2e-2), "mismatch vs reference (B=300)"

    print("KERNEL_OK")
</pallas_src>

<mosaic_0001>
module attributes {stable_mosaic.version = 11 : i64} {
  func.func @mlp_kernel(%arg0: i32, %arg1: memref<8x128xbf16, #tpu.memory_space<vmem>>, %arg2: memref<7x128x128xbf16, #tpu.memory_space<vmem>>, %arg3: memref<8x128xf32, #tpu.memory_space<vmem>>, %arg4: memref<8x128xf32, #tpu.memory_space<vmem>>) attributes {dimension_semantics = [#tpu.dimension_semantics<parallel>], iteration_bounds = array<i64: 1>, scalar_prefetch = 0 : i64, scratch_operands = 0 : i64, tpu.core_type = #tpu.core_type<tc>, window_params = [{transform_indices = @transform_0, window_bounds = array<i64: 8, 128>}, {pipeline_mode = #tpu.pipeline_mode<synchronous>, transform_indices = @transform_1, window_bounds = array<i64: 7, 128, 128>}, {pipeline_mode = #tpu.pipeline_mode<synchronous>, transform_indices = @transform_2, window_bounds = array<i64: 8, 128>}, {transform_indices = @transform_3, window_bounds = array<i64: 8, 128>}]} {
    %c0 = arith.constant 0 : index
    %c0_0 = arith.constant 0 : index
    %0 = vector.load %arg1[%c0, %c0_0] : memref<8x128xbf16, #tpu.memory_space<vmem>>, vector<8x128xbf16>
    %c0_1 = arith.constant 0 : index
    %c0_2 = arith.constant 0 : index
    %c0_3 = arith.constant 0 : index
    %1 = vector.load %arg2[%c0_1, %c0_2, %c0_3] : memref<7x128x128xbf16, #tpu.memory_space<vmem>>, vector<1x128x128xbf16>
    %2 = vector.shape_cast %1 : vector<1x128x128xbf16> to vector<128x128xbf16>
    %cst = arith.constant dense<0.000000e+00> : vector<8x128xf32>
    %3 = tpu.matmul %0, %2, %cst {dimension_numbers = #tpu.dot_dimension_numbers<[1], [0], [0], [1], [0, 0, 1, 1], [], []>} : vector<8x128xbf16>, vector<128x128xbf16>, vector<8x128xf32> -> vector<8x128xf32>
    %c0_4 = arith.constant 0 : index
    %c0_5 = arith.constant 0 : index
    %4 = vector.load %arg3[%c0_4, %c0_5] : memref<8x128xf32, #tpu.memory_space<vmem>>, vector<1x128xf32>
    %5 = vector.shape_cast %4 : vector<1x128xf32> to vector<128xf32>
    %6 = vector.shape_cast %5 : vector<128xf32> to vector<1x128xf32>
    %7 = vector.broadcast %6 : vector<1x128xf32> to vector<8x128xf32>
    %8 = arith.addf %3, %7 : vector<8x128xf32>
    %cst_6 = arith.constant 0.000000e+00 : f32
    %9 = vector.broadcast %cst_6 : f32 to vector<8x128xf32>
    %10 = arith.maximumf %8, %9 : vector<8x128xf32>
    %11 = arith.truncf %10 : vector<8x128xf32> to vector<8x128xbf16>
    %c1 = arith.constant 1 : index
    %c0_7 = arith.constant 0 : index
    %c0_8 = arith.constant 0 : index
    %12 = vector.load %arg2[%c1, %c0_7, %c0_8] : memref<7x128x128xbf16, #tpu.memory_space<vmem>>, vector<1x128x128xbf16>
    %13 = vector.shape_cast %12 : vector<1x128x128xbf16> to vector<128x128xbf16>
    %cst_9 = arith.constant dense<0.000000e+00> : vector<8x128xf32>
    %14 = tpu.matmul %11, %13, %cst_9 {dimension_numbers = #tpu.dot_dimension_numbers<[1], [0], [0], [1], [0, 0, 1, 1], [], []>} : vector<8x128xbf16>, vector<128x128xbf16>, vector<8x128xf32> -> vector<8x128xf32>
    %c1_10 = arith.constant 1 : index
    %c0_11 = arith.constant 0 : index
    %15 = vector.load %arg3[%c1_10, %c0_11] : memref<8x128xf32, #tpu.memory_space<vmem>>, vector<1x128xf32>
    %16 = vector.shape_cast %15 : vector<1x128xf32> to vector<128xf32>
    %17 = vector.shape_cast %16 : vector<128xf32> to vector<1x128xf32>
    %18 = vector.broadcast %17 : vector<1x128xf32> to vector<8x128xf32>
    %19 = arith.addf %14, %18 : vector<8x128xf32>
    %cst_12 = arith.constant 0.000000e+00 : f32
    %20 = vector.broadcast %cst_12 : f32 to vector<8x128xf32>
    %21 = arith.maximumf %19, %20 : vector<8x128xf32>
    %22 = arith.truncf %21 : vector<8x128xf32> to vector<8x128xbf16>
    %c2 = arith.constant 2 : index
    %c0_13 = arith.constant 0 : index
    %c0_14 = arith.constant 0 : index
    %23 = vector.load %arg2[%c2, %c0_13, %c0_14] : memref<7x128x128xbf16, #tpu.memory_space<vmem>>, vector<1x128x128xbf16>
    %24 = vector.shape_cast %23 : vector<1x128x128xbf16> to vector<128x128xbf16>
    %cst_15 = arith.constant dense<0.000000e+00> : vector<8x128xf32>
    %25 = tpu.matmul %22, %24, %cst_15 {dimension_numbers = #tpu.dot_dimension_numbers<[1], [0], [0], [1], [0, 0, 1, 1], [], []>} : vector<8x128xbf16>, vector<128x128xbf16>, vector<8x128xf32> -> vector<8x128xf32>
    %c2_16 = arith.constant 2 : index
    %c0_17 = arith.constant 0 : index
    %26 = vector.load %arg3[%c2_16, %c0_17] : memref<8x128xf32, #tpu.memory_space<vmem>>, vector<1x128xf32>
    %27 = vector.shape_cast %26 : vector<1x128xf32> to vector<128xf32>
    %28 = vector.shape_cast %27 : vector<128xf32> to vector<1x128xf32>
    %29 = vector.broadcast %28 : vector<1x128xf32> to vector<8x128xf32>
    %30 = arith.addf %25, %29 : vector<8x128xf32>
    %cst_18 = arith.constant 0.000000e+00 : f32
    %31 = vector.broadcast %cst_18 : f32 to vector<8x128xf32>
    %32 = arith.maximumf %30, %31 : vector<8x128xf32>
    %33 = arith.truncf %32 : vector<8x128xf32> to vector<8x128xbf16>
    %c3 = arith.constant 3 : index
    %c0_19 = arith.constant 0 : index
    %c0_20 = arith.constant 0 : index
    %34 = vector.load %arg2[%c3, %c0_19, %c0_20] : memref<7x128x128xbf16, #tpu.memory_space<vmem>>, vector<1x128x128xbf16>
    %35 = vector.shape_cast %34 : vector<1x128x128xbf16> to vector<128x128xbf16>
    %cst_21 = arith.constant dense<0.000000e+00> : vector<8x128xf32>
    %36 = tpu.matmul %33, %35, %cst_21 {dimension_numbers = #tpu.dot_dimension_numbers<[1], [0], [0], [1], [0, 0, 1, 1], [], []>} : vector<8x128xbf16>, vector<128x128xbf16>, vector<8x128xf32> -> vector<8x128xf32>
    %c3_22 = arith.constant 3 : index
    %c0_23 = arith.constant 0 : index
    %37 = vector.load %arg3[%c3_22, %c0_23] : memref<8x128xf32, #tpu.memory_space<vmem>>, vector<1x128xf32>
    %38 = vector.shape_cast %37 : vector<1x128xf32> to vector<128xf32>
    %39 = vector.shape_cast %38 : vector<128xf32> to vector<1x128xf32>
    %40 = vector.broadcast %39 : vector<1x128xf32> to vector<8x128xf32>
    %41 = arith.addf %36, %40 : vector<8x128xf32>
    %cst_24 = arith.constant 0.000000e+00 : f32
    %42 = vector.broadcast %cst_24 : f32 to vector<8x128xf32>
    %43 = arith.maximumf %41, %42 : vector<8x128xf32>
    %44 = arith.truncf %43 : vector<8x128xf32> to vector<8x128xbf16>
    %c4 = arith.constant 4 : index
    %c0_25 = arith.constant 0 : index
    %c0_26 = arith.constant 0 : index
    %45 = vector.load %arg2[%c4, %c0_25, %c0_26] : memref<7x128x128xbf16, #tpu.memory_space<vmem>>, vector<1x128x128xbf16>
    %46 = vector.shape_cast %45 : vector<1x128x128xbf16> to vector<128x128xbf16>
    %cst_27 = arith.constant dense<0.000000e+00> : vector<8x128xf32>
    %47 = tpu.matmul %44, %46, %cst_27 {dimension_numbers = #tpu.dot_dimension_numbers<[1], [0], [0], [1], [0, 0, 1, 1], [], []>} : vector<8x128xbf16>, vector<128x128xbf16>, vector<8x128xf32> -> vector<8x128xf32>
    %c4_28 = arith.constant 4 : index
    %c0_29 = arith.constant 0 : index
    %48 = vector.load %arg3[%c4_28, %c0_29] : memref<8x128xf32, #tpu.memory_space<vmem>>, vector<1x128xf32>
    %49 = vector.shape_cast %48 : vector<1x128xf32> to vector<128xf32>
    %50 = vector.shape_cast %49 : vector<128xf32> to vector<1x128xf32>
    %51 = vector.broadcast %50 : vector<1x128xf32> to vector<8x128xf32>
    %52 = arith.addf %47, %51 : vector<8x128xf32>
    %cst_30 = arith.constant 0.000000e+00 : f32
    %53 = vector.broadcast %cst_30 : f32 to vector<8x128xf32>
    %54 = arith.maximumf %52, %53 : vector<8x128xf32>
    %55 = arith.truncf %54 : vector<8x128xf32> to vector<8x128xbf16>
    %c5 = arith.constant 5 : index
    %c0_31 = arith.constant 0 : index
    %c0_32 = arith.constant 0 : index
    %56 = vector.load %arg2[%c5, %c0_31, %c0_32] : memref<7x128x128xbf16, #tpu.memory_space<vmem>>, vector<1x128x128xbf16>
    %57 = vector.shape_cast %56 : vector<1x128x128xbf16> to vector<128x128xbf16>
    %cst_33 = arith.constant dense<0.000000e+00> : vector<8x128xf32>
    %58 = tpu.matmul %55, %57, %cst_33 {dimension_numbers = #tpu.dot_dimension_numbers<[1], [0], [0], [1], [0, 0, 1, 1], [], []>} : vector<8x128xbf16>, vector<128x128xbf16>, vector<8x128xf32> -> vector<8x128xf32>
    %c5_34 = arith.constant 5 : index
    %c0_35 = arith.constant 0 : index
    %59 = vector.load %arg3[%c5_34, %c0_35] : memref<8x128xf32, #tpu.memory_space<vmem>>, vector<1x128xf32>
    %60 = vector.shape_cast %59 : vector<1x128xf32> to vector<128xf32>
    %61 = vector.shape_cast %60 : vector<128xf32> to vector<1x128xf32>
    %62 = vector.broadcast %61 : vector<1x128xf32> to vector<8x128xf32>
    %63 = arith.addf %58, %62 : vector<8x128xf32>
    %cst_36 = arith.constant 0.000000e+00 : f32
    %64 = vector.broadcast %cst_36 : f32 to vector<8x128xf32>
    %65 = arith.maximumf %63, %64 : vector<8x128xf32>
    %66 = arith.truncf %65 : vector<8x128xf32> to vector<8x128xbf16>
    %c6 = arith.constant 6 : index
    %c0_37 = arith.constant 0 : index
    %c0_38 = arith.constant 0 : index
    %67 = vector.load %arg2[%c6, %c0_37, %c0_38] : memref<7x128x128xbf16, #tpu.memory_space<vmem>>, vector<1x128x128xbf16>
    %68 = vector.shape_cast %67 : vector<1x128x128xbf16> to vector<128x128xbf16>
    %cst_39 = arith.constant dense<0.000000e+00> : vector<8x128xf32>
    %69 = tpu.matmul %66, %68, %cst_39 {dimension_numbers = #tpu.dot_dimension_numbers<[1], [0], [0], [1], [0, 0, 1, 1], [], []>} : vector<8x128xbf16>, vector<128x128xbf16>, vector<8x128xf32> -> vector<8x128xf32>
    %c6_40 = arith.constant 6 : index
    %c0_41 = arith.constant 0 : index
    %70 = vector.load %arg3[%c6_40, %c0_41] : memref<8x128xf32, #tpu.memory_space<vmem>>, vector<1x128xf32>
    %71 = vector.shape_cast %70 : vector<1x128xf32> to vector<128xf32>
    %72 = vector.shape_cast %71 : vector<128xf32> to vector<1x128xf32>
    %73 = vector.broadcast %72 : vector<1x128xf32> to vector<8x128xf32>
    %74 = arith.addf %69, %73 : vector<8x128xf32>
    %75 = vector.extract_strided_slice %74 {offsets = [0, 1], sizes = [8, 1], strides = [1, 1]} : vector<8x128xf32> to vector<8x1xf32>
    %76 = vector.extract_strided_slice %74 {offsets = [0, 0], sizes = [8, 1], strides = [1, 1]} : vector<8x128xf32> to vector<8x1xf32>
    %77 = arith.subf %75, %76 : vector<8x1xf32>
    %cst_42 = arith.constant 0.000000e+00 : f32
    %78 = vector.broadcast %cst_42 : f32 to vector<8x1xf32>
    %79 = arith.subf %78, %77 : vector<8x1xf32>
    %80 = math.exp %79 : vector<8x1xf32>
    %cst_43 = arith.constant 1.000000e+00 : f32
    %81 = vector.broadcast %cst_43 : f32 to vector<8x1xf32>
    %82 = arith.addf %81, %80 : vector<8x1xf32>
    %83 = tpu.reciprocal %82 {approx = true} : vector<8x1xf32> -> vector<8x1xf32>
    %cst_44 = arith.constant 1.000000e+00 : f32
    %84 = vector.broadcast %cst_44 : f32 to vector<8x1xf32>
    %85 = arith.subf %84, %83 : vector<8x1xf32>
    %86 = tpu.iota {dimensions = array<i32: 1>} : vector<8x128xi32>
    %c0_i32 = arith.constant 0 : i32
    %87 = vector.broadcast %c0_i32 : i32 to vector<8x128xi32>
    %88 = arith.cmpi eq, %86, %87 : vector<8x128xi32>
    %c1_i32 = arith.constant 1 : i32
    %89 = vector.broadcast %c1_i32 : i32 to vector<8x128xi32>
    %90 = arith.cmpi eq, %86, %89 : vector<8x128xi32>
    %cst_45 = arith.constant 0.000000e+00 : f32
    %91 = vector.shape_cast %83 : vector<8x1xf32> to vector<8x1xf32>
    %92 = vector.broadcast %91 : vector<8x1xf32> to vector<8x128xf32>
    %93 = vector.broadcast %cst_45 : f32 to vector<8x128xf32>
    %94 = arith.select %90, %92, %93 : vector<8x128xi1>, vector<8x128xf32>
    %95 = vector.shape_cast %85 : vector<8x1xf32> to vector<8x1xf32>
    %96 = vector.broadcast %95 : vector<8x1xf32> to vector<8x128xf32>
    %97 = arith.select %88, %96, %94 : vector<8x128xi1>, vector<8x128xf32>
    %c0_46 = arith.constant 0 : index
    %c0_47 = arith.constant 0 : index
    %98 = vector.load %arg4[%c0_46, %c0_47] : memref<8x128xf32, #tpu.memory_space<vmem>>, vector<8x128xf32>
    tpu.vector_store %arg4[%c0_46, %c0_47], %97 {strides = array<i32>} : memref<8x128xf32, #tpu.memory_space<vmem>>, vector<8x128xf32>,
    return
  }
  func.func @transform_0(%arg0: i32) -> (i32, i32) {
    %c0_i32 = arith.constant 0 : i32
    %c0_i32_0 = arith.constant 0 : i32
    return %arg0, %c0_i32 : i32, i32
  }
  func.func @transform_1(%arg0: i32) -> (i32, i32, i32) {
    %c0_i32 = arith.constant 0 : i32
    %c0_i32_0 = arith.constant 0 : i32
    %c0_i32_1 = arith.constant 0 : i32
    %c0_i32_2 = arith.constant 0 : i32
    return %c0_i32, %c0_i32_0, %c0_i32_1 : i32, i32, i32
  }
  func.func @transform_2(%arg0: i32) -> (i32, i32) {
    %c0_i32 = arith.constant 0 : i32
    %c0_i32_0 = arith.constant 0 : i32
    %c0_i32_1 = arith.constant 0 : i32
    return %c0_i32, %c0_i32_0 : i32, i32
  }
  func.func @transform_3(%arg0: i32) -> (i32, i32) {
    %c0_i32 = arith.constant 0 : i32
    %c0_i32_0 = arith.constant 0 : i32
    return %arg0, %c0_i32 : i32, i32
  }
}

</mosaic_0001>

<bundles_post_ra>
// kernel: mymodule3_forward.1
= control target key start
LH: loop header
LB: loop body
LE: loop exit
PB: predicated region body
PF: predicated region fallthrough
CT: control target
= control target key end

     0   :  { %8 = vsyncpa [#allocation3], 0  ;;  %s959_s15 = smov [#allocation2]   ;;  %s960_s17 = smov 64   ;;  %s1014_s0 = inlined_call_operand.vmem [shape: bf16[8,128], index: 0, kind: input, shape index: {}]   ;;  %s1015_s1 = inlined_call_operand.hbm [shape: bf16[7,128,128], index: 1, kind: input, shape index: {}]   ;;  %s1016_s2 = inlined_call_operand.vmem [shape: f32[8,128], index: 2, kind: input, shape index: {}]   ;;  %s1017_s3 = inlined_call_operand.vmem [shape: f32[8,128], index: 3, kind: output, shape index: {}]  }
   0x1   :  { %s15_s14 = sshll.u32 %s1015_s1, 4  ;;  %s17_s16 = sshll.u32 %s959_s15, 4  ;;  %s16_s14 = int_to_ptr.hbm [resolvable:$true] %s15_s14  ;;  %s18_s16 = int_to_ptr.vmem [resolvable:$true] %s17_s16 }
   0x2   :  { %s961_s18 = smov 4  }
   0x3   :  { %23 = dma.hbm_to_vmem [thread:$0]  %s16_s14, 7168, %s18_s16, [#allocation3], %s960_s17, %s960_s17, %s961_s18  }
   0x4   :  { %957 = dma.done.wait [#allocation3], 7168  }
   0x5   :  { %958 = vsyncadd [#allocation3], 4294960128  ;;  %v866_v0 = vld [vmem:[#allocation2 + $0x38] sm:$0xff]  ;;  %v865_v1 = vld [vmem:[#allocation2 + $0x30] sm:$0xff]  ;;  %s962_s6 = smov 1  }
   0x6   :  { %97 = vmatpush.bf16.msra.mxu0 %v866_v0  ;;  %v874_v2 = vld [vmem:[#allocation2 + $0x78] sm:$0xff]  ;;  %v864_v3 = vld [vmem:[#allocation2 + $0x28] sm:$0xff]  ;;  %v873_v4 = vld [vmem:[#allocation2 + $0x70] sm:$0xff] }
   0x7   :  { %179 = vmatpush.bf16.msra.mxu1 %v874_v2  ;;  %v872_v5 = vld [vmem:[#allocation2 + $0x68] sm:$0xff]  ;;  %v863_v6 = vld [vmem:[#allocation2 + $0x20] sm:$0xff]  ;;  %v862_v8 = vld [vmem:[#allocation2 + $0x18] sm:$0xff] }
   0x8   :  { %v871_v7 = vld [vmem:[#allocation2 + $0x60] sm:$0xff]  ;;  %v870_v9 = vld [vmem:[#allocation2 + $0x58] sm:$0xff]  ;;  %v861_v10 = vld [vmem:[#allocation2 + $0x10] sm:$0xff] }
   0x9   :  { %v869_v11 = vld [vmem:[#allocation2 + $0x50] sm:$0xff]  ;;  %v860_v12 = vld [vmem:[#allocation2 + $0x8] sm:$0xff]  ;;  %v859_v13 = vld [vmem:[#allocation2] sm:$0xff] }
   0xa   :  { %98 = vmatpush.bf16.msra.mxu0 %v865_v1  ;;  %v30_v14 = vld [vmem:[%s1014_s0] sm:$0xf]  ;;  %v868_v15 = vld [vmem:[#allocation2 + $0x48] sm:$0xff]  ;;  %v882_v17 = vld [vmem:[#allocation2 + $0xb8] sm:$0xff] }
   0xb   :  { %180 = vmatpush.bf16.msra.mxu1 %v873_v4  ;;  %v867_v16 = vld [vmem:[#allocation2 + $0x40] sm:$0xff]  ;;  %261 = vmatpush.bf16.msra.mxu2 %v882_v17  ;;  %v881_v18 = vld [vmem:[#allocation2 + $0xb0] sm:$0xff]  ;;  %v880_v19 = vld [vmem:[#allocation2 + $0xa8] sm:$0xff] }
   0xc   :  { %v879_v20 = vld [vmem:[#allocation2 + $0xa0] sm:$0xff]  ;;  %v878_v21 = vld [vmem:[#allocation2 + $0x98] sm:$0xff]  ;;  %v877_v22 = vld [vmem:[#allocation2 + $0x90] sm:$0xff] }
   0xd   :  { %v922_v23 = vld [vmem:[%s1016_s2] ss:$0 sm:$0xff]  ;;  %v876_v29 = vld [vmem:[#allocation2 + $0x88] sm:$0xff]  ;;  %v890_v31 = vld [vmem:[#allocation2 + $0xf8] sm:$0xff] }
   0xe   :  { %99 = vmatpush.bf16.msra.mxu0 %v864_v3  ;;  %v875_v30 = vld [vmem:[#allocation2 + $0x80] sm:$0xff]  ;;  %343 = vmatpush.bf16.msra.mxu3 %v890_v31  ;;  %v889_v32 = vld [vmem:[#allocation2 + $0xf0] sm:$0xff]  ;;  %v888_v33 = vld [vmem:[#allocation2 + $0xe8] sm:$0xff] }
   0xf   :  { %181 = vmatpush.bf16.msra.mxu1 %v872_v5  ;;  %262 = vmatpush.bf16.msra.mxu2 %v881_v18  ;;  %v887_v34 = vld [vmem:[#allocation2 + $0xe0] sm:$0xff]  ;;  %v886_v35 = vld [vmem:[#allocation2 + $0xd8] sm:$0xff]  ;;  %v885_v36 = vld [vmem:[#allocation2 + $0xd0] sm:$0xff] }
  0x10   :  { %v923_v37 = vld [vmem:[%s1016_s2 + $0x1] ss:$0 sm:$0xff]  ;;  %v884_v43 = vld [vmem:[#allocation2 + $0xc8] sm:$0xff]  ;;  %v898_v45 = vld [vmem:[#allocation2 + $0x138] sm:$0xff] }
  0x11   :  { %v883_v44 = vld [vmem:[#allocation2 + $0xc0] sm:$0xff]  ;;  %v897_v46 = vld [vmem:[#allocation2 + $0x130] sm:$0xff]  ;;  %v896_v47 = vld [vmem:[#allocation2 + $0x128] sm:$0xff] }
  0x12   :  { %100 = vmatpush.bf16.msra.mxu0 %v863_v6  ;;  %344 = vmatpush.bf16.msra.mxu3 %v889_v32  ;;  %v895_v48 = vld [vmem:[#allocation2 + $0x120] sm:$0xff]  ;;  %v894_v49 = vld [vmem:[#allocation2 + $0x118] sm:$0xff]  ;;  %v893_v50 = vld [vmem:[#allocation2 + $0x110] sm:$0xff] }
  0x13   :  { %182 = vmatpush.bf16.msra.mxu1 %v871_v7  ;;  %263 = vmatpush.bf16.msra.mxu2 %v880_v19  ;;  %v924_v51 = vld [vmem:[%s1016_s2 + $0x2] ss:$0 sm:$0xff]  ;;  %v892_v57 = vld [vmem:[#allocation2 + $0x108] sm:$0xff]  ;;  %v906_v59 = vld [vmem:[#allocation2 + $0x178] sm:$0xff] }
  0x14   :  { %v891_v58 = vld [vmem:[#allocation2 + $0x100] sm:$0xff]  ;;  %v905_v60 = vld [vmem:[#allocation2 + $0x170] sm:$0xff]  ;;  %v904_v61 = vld [vmem:[#allocation2 + $0x168] sm:$0xff] }
  0x15   :  { %v903_v62 = vld [vmem:[#allocation2 + $0x160] sm:$0xff]  ;;  %v902_v63 = vld [vmem:[#allocation2 + $0x158] sm:$0xff]  ;;  %v901_v0 = vld [vmem:[#allocation2 + $0x150] sm:$0xff] }
  0x16   :  { %101 = vmatpush.bf16.msra.mxu0 %v862_v8  ;;  %345 = vmatpush.bf16.msra.mxu3 %v888_v33  ;;  %v925_v1 = vld [vmem:[%s1016_s2 + $0x3] ss:$0 sm:$0xff]  ;;  %v900_v7 = vld [vmem:[#allocation2 + $0x148] sm:$0xff]  ;;  %v963_v33 = vmov 1  }
  0x17   :  { %183 = vmatpush.bf16.msra.mxu1 %v870_v9  ;;  %264 = vmatpush.bf16.msra.mxu2 %v879_v20  ;;  %v899_v8 = vld [vmem:[#allocation2 + $0x140] sm:$0xff]  ;;  %v914_v9 = vld [vmem:[#allocation2 + $0x1b8] sm:$0xff] }
  0x18   :  { %920 = vset.pattern.permute.xlu0 %v963_v33  ;;  %921 = vset.pattern.permute.xlu1 %v963_v33 }
  0x1a   :  { %102 = vmatpush.bf16.msra.mxu0 %v861_v10  ;;  %346 = vmatpush.bf16.msra.mxu3 %v887_v34  ;;  %v913_v10 = vld [vmem:[#allocation2 + $0x1b0] sm:$0xff] }
  0x1b   :  { %184 = vmatpush.bf16.msra.mxu1 %v869_v11  ;;  %265 = vmatpush.bf16.msra.mxu2 %v878_v21  ;;  %v912_v11 = vld [vmem:[#allocation2 + $0x1a8] sm:$0xff] }
  0x1c   :  { %v908_v21 = vld [vmem:[#allocation2 + $0x188] sm:$0xff] }
  0x1e   :  { %103 = vmatpush.bf16.msra.mxu0 %v860_v12  ;;  %347 = vmatpush.bf16.msra.mxu3 %v886_v35  ;;  %v911_v12 = vld [vmem:[#allocation2 + $0x1a0] sm:$0xff] }
  0x1f   :  { %185 = vmatpush.bf16.msra.mxu1 %v868_v15  ;;  %266 = vmatpush.bf16.msra.mxu2 %v877_v22  ;;  %v926_v15 = vld [vmem:[%s1016_s2 + $0x4] ss:$0 sm:$0xff] }
  0x20   :  { %v907_v22 = vld [vmem:[#allocation2 + $0x180] sm:$0xff] }
  0x22   :  { %104 = vmatpush.bf16.msra.mxu0 %v859_v13  ;;  %348 = vmatpush.bf16.msra.mxu3 %v885_v36  ;;  %v910_v13 = vld [vmem:[#allocation2 + $0x198] sm:$0xff] }
  0x23   :  { %186 = vmatpush.bf16.msra.mxu1 %v867_v16  ;;  %267 = vmatpush.bf16.msra.mxu2 %v876_v29  ;;  %v928_v29 = vld [vmem:[%s1016_s2 + $0x6] ss:$0 sm:$0xff] }
  0x25   :  { %105 = vmatmul.bf16.vlgmr.msra.gmra.mxu0 %v30_v14  ;;  %v909_v14 = vld [vmem:[#allocation2 + $0x190] sm:$0xff] }
  0x26   :  { %349 = vmatpush.bf16.msra.mxu3 %v884_v43  ;;  %425 = vmatpush.bf16.msrb.mxu0 %v898_v45 }
  0x27   :  { %268 = vmatpush.bf16.msra.mxu2 %v875_v30  ;;  %507 = vmatpush.bf16.msrb.mxu1 %v906_v59 }
  0x2a   :  { %350 = vmatpush.bf16.msra.mxu3 %v883_v44  ;;  %426 = vmatpush.bf16.msrb.mxu0 %v897_v46 }
  0x2b   :  { %508 = vmatpush.bf16.msrb.mxu1 %v905_v60  ;;  %589 = vmatpush.bf16.msrb.mxu2 %v914_v9 }
  0x2e   :  { %427 = vmatpush.bf16.msrb.mxu0 %v896_v47 }
  0x2f   :  { %509 = vmatpush.bf16.msrb.mxu1 %v904_v61  ;;  %590 = vmatpush.bf16.msrb.mxu2 %v913_v10 }
  0x32   :  { %428 = vmatpush.bf16.msrb.mxu0 %v895_v48 }
  0x33   :  { %510 = vmatpush.bf16.msrb.mxu1 %v903_v62  ;;  %591 = vmatpush.bf16.msrb.mxu2 %v912_v11 }
  0x36   :  { %429 = vmatpush.bf16.msrb.mxu0 %v894_v49 }
  0x37   :  { %511 = vmatpush.bf16.msrb.mxu1 %v902_v63  ;;  %592 = vmatpush.bf16.msrb.mxu2 %v911_v12 }
  0x3a   :  { %430 = vmatpush.bf16.msrb.mxu0 %v893_v50 }
  0x3b   :  { %512 = vmatpush.bf16.msrb.mxu1 %v901_v0  ;;  %593 = vmatpush.bf16.msrb.mxu2 %v910_v13 }
  0x3e   :  { %431 = vmatpush.bf16.msrb.mxu0 %v892_v57 }
  0x3f   :  { %513 = vmatpush.bf16.msrb.mxu1 %v900_v7  ;;  %594 = vmatpush.bf16.msrb.mxu2 %v909_v14 }
  0x42   :  { %432 = vmatpush.bf16.msrb.mxu0 %v891_v58 }
  0x43   :  { %514 = vmatpush.bf16.msrb.mxu1 %v899_v8  ;;  %595 = vmatpush.bf16.msrb.mxu2 %v908_v21 }
  0x47   :  { %596 = vmatpush.bf16.msrb.mxu2 %v907_v22 }
  0xa2   :  { %v106_v24 = vpop.f32.mrf.mxu0 }
  0xa3   :  { %v107_v25 = vadd.f32 %v922_v23, %v106_v24  ;;  %v927_v23 = vld [vmem:[%s1016_s2 + $0x5] ss:$0 sm:$0xff] }
  0xa5   :  { %v110_v26 = vmax.f32 %v107_v25, 0.0 }
  0xa7   :  { %v111_v27 = vpack.c.bf16 %v110_v26, %v110_v26 }
  0xa9   :  { %187 = vmatmul.bf16.vlgmr.msra.gmra.mxu1 %v111_v27 }
  0xaa   :  { %v108_v28 = vpop.f32.mrf.mxu0 }
 0x126   :  { %v188_v38 = vpop.f32.mrf.mxu1 }
 0x127   :  { %v189_v39 = vadd.f32 %v923_v37, %v188_v38 }
 0x129   :  { %v192_v40 = vmax.f32 %v189_v39, 0.0 }
 0x12b   :  { %v193_v41 = vpack.c.bf16 %v192_v40, %v192_v40 }
 0x12d   :  { %269 = vmatmul.bf16.vlgmr.msra.gmra.mxu2 %v193_v41 }
 0x12e   :  { %v190_v42 = vpop.f32.mrf.mxu1 }
 0x12f   :  { %v613_v42 = vlaneseq }
 0x131   :  { %v614_v43 = vand.u32 127, %v613_v42 }
 0x133   :  { %vm616_vm0 = vcmp.eq.s32.totalorder %v614_v43, 1  ;;  %vm615_vm1 = vcmp.eq.s32.totalorder %v614_v43, 0 }
 0x1b0   :  { %v270_v52 = vpop.f32.mrf.mxu2 }
 0x1b1   :  { %v271_v53 = vadd.f32 %v924_v51, %v270_v52 }
 0x1b3   :  { %v274_v54 = vmax.f32 %v271_v53, 0.0 }
 0x1b5   :  { %v275_v55 = vpack.c.bf16 %v274_v54, %v274_v54 }
 0x1b7   :  { %351 = vmatmul.bf16.vlgmr.msra.gmra.mxu3 %v275_v55 }
 0x1b8   :  { %v272_v56 = vpop.f32.mrf.mxu2 }
 0x23a   :  { %v352_v2 = vpop.f32.mrf.mxu3 }
 0x23b   :  { %v353_v3 = vadd.f32 %v925_v1, %v352_v2 }
 0x23d   :  { %v356_v4 = vmax.f32 %v353_v3, 0.0 }
 0x23f   :  { %v357_v5 = vpack.c.bf16 %v356_v4, %v356_v4 }
 0x241   :  { %433 = vmatmul.bf16.vlgmr.msrb.gmra.mxu0 %v357_v5 }
 0x242   :  { %v354_v6 = vpop.f32.mrf.mxu3 }
 0x2be   :  { %v434_v16 = vpop.f32.mrf.mxu0 }
 0x2bf   :  { %v435_v17 = vadd.f32 %v926_v15, %v434_v16 }
 0x2c1   :  { %v438_v18 = vmax.f32 %v435_v17, 0.0 }
 0x2c3   :  { %v439_v19 = vpack.c.bf16 %v438_v18, %v438_v18 }
 0x2c5   :  { %515 = vmatmul.bf16.vlgmr.msrb.gmra.mxu1 %v439_v19 }
 0x2c6   :  { %v436_v20 = vpop.f32.mrf.mxu0 }
 0x342   :  { %v516_v24 = vpop.f32.mrf.mxu1 }
 0x343   :  { %v517_v25 = vadd.f32 %v927_v23, %v516_v24 }
 0x345   :  { %v520_v26 = vmax.f32 %v517_v25, 0.0 }
 0x347   :  { %v521_v27 = vpack.c.bf16 %v520_v26, %v520_v26 }
 0x349   :  { %597 = vmatmul.bf16.vlgmr.msrb.gmra.mxu2 %v521_v27 }
 0x34a   :  { %v518_v28 = vpop.f32.mrf.mxu1 }
 0x3cc   :  { %v598_v30 = vpop.f32.mrf.mxu2 }
 0x3cd   :  { %v599_v31 = vadd.f32 %v928_v29, %v598_v30 }
 0x3cf   :  { %603 = vrot.lane.b32.xlu0 %v599_v31, %s962_s6 }
 0x3d4   :  { %v600_v32 = vpop.f32.mrf.mxu2 }
 0x441   :  { %v604_v34 = vpop.permute.xlu0 %603 }
 0x442   :  { %v606_v35 = vsub.f32 %v599_v31, %v604_v34 }
 0x444   :  { %v607_v36 = vsub.f32 0.0, %v606_v35 }
 0x446   :  { %v608_v37 = vmul.f32 1.442695, %v607_v36 }
 0x448   :  { %929 = vpow2.f32 %v608_v37 }
 0x44e   :  { %v930_v38 = vpop.eup %929 }
 0x44f   :  { %v610_v39 = vadd.f32 1.0, %v930_v38 }
 0x451   :  { %931 = vrcp.f32 %v610_v39 }
 0x457   :  { %v932_v40 = vpop.eup %931 }
 0x458   :  { %619 = vperm.xlu0 %920, %v932_v40   ;;  %v612_v41 = vsub.f32 1.0, %v932_v40 }
 0x45a   :  { %625 = vperm.xlu1 %921, %v612_v41  }
 0x4ca   :  { %v620_v44 = vpop.permute.xlu0 %619 }
 0x4cb   :  { %v622_v45 = vsel %vm616_vm0, %v620_v44, 0.0 }
 0x4cc   :  { %v626_v46 = vpop.permute.xlu1 %625 }
 0x4cd   :  { %v628_v47 = vsel %vm615_vm1, %v626_v46, %v622_v45 }
 0x4ce   :  { %629 = vst [vmem:[%s1017_s3] sm:$0xff] %v628_v47 }
 0x4cf   :  { %634 = vsyncpa [#allocation3], 1 }

</bundles_post_ra>
